<compile_context>
chip_gen: v6e
topology: v6e:2x2x1
jax: 0.10.0
libtpu: 0.0.40
codegen_flags: <defaults>
</compile_context>

<pallas_src>
import jax
import jax.numpy as jnp
import numpy as np
from jax import lax
from jax.experimental import pallas as pl
from jax.experimental.pallas import tpu as pltpu

EPS = 1e-5


def _vmem_limit_bytes():
    """Scoped-VMEM budget per generation (~96 MiB v5e/v6e, ~48 MiB v7x)."""
    try:
        cap = pltpu.get_tpu_info().vmem_capacity_bytes
    except Exception:
        cap = 64 * 1024 * 1024          # conservative fallback (covers v7x)
    return min(int(cap * 3 // 4), 100 * 1024 * 1024)


def _pick_row_tile(H, W, Cin1, Cout, vmem_limit, row_tile):
    """Largest row tile (divisor of H) whose blocks + temporaries fit the budget."""
    wp = W + 2
    L = wp * Cin1
    wc = W * Cout
    if row_tile is not None:
        th = max(1, min(H, int(row_tile)))
        while H % th:
            th -= 1
        return th
    budget = int(0.7 * vmem_limit)
    w_bytes = 2 * 3 * L * 2 * wc * 4                 # resident banded weights
    for th in range(H, 0, -1):
        if H % th:
            continue
        in_bytes = (th + 2) * L * 4                  # double-buffered input block
        out_bytes = th * wc * 4                      # double-buffered output block
        if w_bytes + 3 * in_bytes + 8 * out_bytes <= budget:   # + in-kernel temps
            return th
    return 1


def _fold_weights(params, W):
    """Fold 1x1 conv (+b1), the 3x3 depthwise kw-taps, and b2 into three banded
    (L, 2*W*Cout) matrices, one per kh.  Rows are input lanes (w_in, channel),
    columns are output lanes (branch, w_out, cout)."""
    w1 = jnp.concatenate([params['w1f'], params['w1m']], axis=1)    # (Cin, 2C)
    b1 = jnp.concatenate([params['b1f'], params['b1m']], axis=1)    # (1, 2C)
    w2 = jnp.concatenate([params['w2f'], params['w2m']], axis=1)    # (9, 2C)
    b2 = jnp.concatenate([params['b2f'], params['b2m']], axis=1)    # (1, 2C)
    cin, c2 = w1.shape
    c = c2 // 2
    cin1 = cin + 1
    wp = W + 2

    # 1x1 folded into every 3x3 tap; b1 rides on an appended ones channel (zero at
    # padded positions, exactly matching zero padding of the 1x1 output).
    w1_aug = jnp.concatenate([w1, b1], axis=0)                      # (Cin+1, 2C)
    w_comb = w1_aug[None, :, :] * w2[:, None, :]                    # (9, Cin+1, 2C)
    # b2 folded into the centre tap's ones-channel row (the centre tap always
    # reads an interior pixel, where the ones channel is 1).
    w_comb = w_comb.at[4, cin, :].add(b2[0])

    # Banded fold of the kw taps.
    kw = np.arange(wp)[:, None] - np.arange(W)[None, :]             # (WP, W)
    valid = (kw >= 0) & (kw <= 2)
    kw_c = np.clip(kw, 0, 2)
    wc4 = w_comb.reshape(3, 3, cin1, c2)
    band = wc4[:, kw_c]                                             # (3, WP, W, Cin+1, 2C)
    band = jnp.where(valid[None, :, :, None, None], band, 0.0)
    band = band.reshape(3, wp, W, cin1, 2, c)
    band = jnp.transpose(band, (0, 1, 3, 4, 2, 5))                  # (3, WP, Cin+1, 2, W, C)
    # TODO(synk): banded weight is O(W^2*Cout*Cin); for very wide images tile W too.
    return band.reshape(3, wp * cin1, 2 * W * c)                    # (3, L, 2*W*C)


# ---------------------------------------------------------------------------
# Fused kernel: folded conv stack -> ELU*sigmoid gate -> BatchNorm partial stats
# ---------------------------------------------------------------------------
def _gated_kernel(x_ref, w_ref, g_ref, stat_ref):
    # x_ref:    (1, 1, TH+2, (W+2)*(Cin+1))   halo'ed, ones-augmented, lane-dense tile
    # w_ref:    (3, (W+2)*(Cin+1), 2*W*Cout)  kw-banded folded weights, one per kh
    # g_ref:    (1, 1, TH, W*Cout)            lane-dense gated activation
    # stat_ref: (1, 1, 2, W*Cout)             per-(w,c) partial sum / sum of squares
    th = x_ref.shape[2] - 2
    wc = g_ref.shape[3]
    xt = x_ref[0, 0]                                            # (TH+2, L)

    # Whole conv stack (1x1 + depthwise 3x3, both branches, both biases) as three
    # MXU matmuls; kh taps are cheap sublane slices, kw taps live in the band.
    z = jnp.dot(xt[0:th, :], w_ref[0], preferred_element_type=jnp.float32)
    z = z + jnp.dot(xt[1:th + 1, :], w_ref[1], preferred_element_type=jnp.float32)
    z = z + jnp.dot(xt[2:th + 2, :], w_ref[2], preferred_element_type=jnp.float32)

    zf = z[:, :wc]                                              # features pre-activation
    zm = z[:, wc:]                                              # mask pre-activation
    features = jnp.where(zf > 0, zf, jnp.exp(jnp.minimum(zf, 0.0)) - 1.0)  # ELU(1.0)
    g = features * jax.nn.sigmoid(zm)                           # (TH, W*Cout)

    # Per-(w, c) partials for the two-pass BatchNorm, written with a single store.
    stat_ref[...] = jnp.concatenate(
        [jnp.sum(g, axis=0, keepdims=True),
         jnp.sum(g * g, axis=0, keepdims=True)], axis=0).reshape(1, 1, 2, wc)

    # Lane-dense (W*Cout minor) unmasked store of the gated intermediate.
    # TODO(synk): store g in bf16 to halve its HBM traffic (needs ~1e-2 tolerance).
    g_ref[...] = g.reshape(1, 1, th, wc).astype(g_ref.dtype)


def gated_block_sd(x_nchw, params, row_tile=None):
    """Forward pass. NCHW in, NCHW out (matches the PyTorch module)."""
    # Boundary transpose required by the NCHW interface; keep the surrounding
    # model NHWC to eliminate this pass entirely.
    x = jnp.transpose(x_nchw, (0, 2, 3, 1)).astype(jnp.float32)     # NHWC
    B, H, W, Cin = x.shape
    Cout = params['w1f'].shape[1]
    Cin1 = Cin + 1
    L = (W + 2) * Cin1
    WC = W * Cout

    vmem_limit = _vmem_limit_bytes()
    TH = _pick_row_tile(H, W, Cin1, Cout, vmem_limit, row_tile)
    NT = H // TH

    w_band = _fold_weights(params, W)                               # (3, L, 2*WC)
    # TODO(synk): cast w_band / x to bf16 (keep f32 accumulation) on v6e/v7x to
    # halve matmul-input DMA bytes once the test tolerance is relaxed.

    # Ones channel carries b1 through the zero padding; flatten so the minor dim
    # of every block the kernel DMAs is lane-dense.
    ones = jnp.ones((B, H, W, 1), x.dtype)
    x_aug = jnp.concatenate([x, ones], axis=-1)                     # (B, H, W, Cin+1)
    x_pad = jnp.pad(x_aug, ((0, 0), (1, 1), (1, 1), (0, 0)))        # zero padding
    x_flat = x_pad.reshape(B, H + 2, L)

    if NT == 1:
        # Whole image per grid step: halo comes straight from the padded input,
        # no extra stacked copy / HBM round trip.
        x_tiles = x_flat.reshape(B, 1, H + 2, L)
    else:
        # TODO(synk): replace with pl.Element row-window BlockSpecs on x_flat to
        # avoid re-materializing the (TH+2)/TH halo-duplicated copy when NT > 1.
        x_tiles = jnp.stack(
            [x_flat[:, t * TH:t * TH + TH + 2] for t in range(NT)], axis=1)

    gated, stats = pl.pallas_call(
        _gated_kernel,
        grid=(B, NT),
        in_specs=[
            pl.BlockSpec((1, 1, TH + 2, L), lambda b, t: (b, t, 0, 0)),
            # TODO(synk): on v5e consider pipeline_mode=pl.Buffered(3) here if the
            # input DMA is still exposed after the larger tiles.
            pl.BlockSpec((3, L, 2 * WC), lambda b, t: (0, 0, 0)),
        ],
        out_specs=[
            pl.BlockSpec((1, 1, TH, WC), lambda b, t: (b, t, 0, 0)),
            pl.BlockSpec((1, 1, 2, WC), lambda b, t: (b, t, 0, 0)),
        ],
        out_shape=[
            jax.ShapeDtypeStruct((B, NT, TH, WC), jnp.float32),
            jax.ShapeDtypeStruct((B, NT, 2, WC), jnp.float32),
        ],
        compiler_params=pltpu.CompilerParams(
            dimension_semantics=("parallel", "parallel"),
            vmem_limit_bytes=vmem_limit,
        ),
    )(x_tiles, w_band)

    # ---- global batch statistics (training-mode BatchNorm2d, biased variance) ---
    # TODO(synk): E[x^2]-E[x]^2 in f32; switch to a centered reduction if real
    # activations have large means.
    n = float(B * H * W)
    ssum = jnp.sum(stats[:, :, 0, :].reshape(B, NT, W, Cout), axis=(0, 1, 2))
    sqsum = jnp.sum(stats[:, :, 1, :].reshape(B, NT, W, Cout), axis=(0, 1, 2))
    mean = ssum / n
    var = jnp.maximum(sqsum / n - mean * mean, 0.0)
    inv = lax.rsqrt(var + EPS)
    scale = params['gamma'].reshape(-1) * inv                       # (C,)
    shift = params['beta'].reshape(-1) - mean * scale               # (C,)

    # Affine normalize is left to XLA so it fuses into the NCHW boundary transpose
    # (no second Pallas pass, no extra HBM round trip of the output).
    gated_nhwc = gated.reshape(B, H, W, Cout)                       # free reshape
    out_nhwc = gated_nhwc * scale.reshape(1, 1, 1, Cout) + shift.reshape(1, 1, 1, Cout)
    # TODO(synk): median_blur (median_filter=True path) not implemented; default is False.
    return jnp.transpose(out_nhwc, (0, 3, 1, 2))


# ---------------------------------------------------------------------------
# Pure-JAX reference mirroring the PyTorch module (NCHW)
# ---------------------------------------------------------------------------
def reference_forward(x_nchw, p):
    def branch(w1, b1, w2, b2):
        Cout = w1.shape[1]
        wt1 = jnp.transpose(w1, (1, 0))[:, :, None, None]                      # (Cout, Cin, 1, 1)
        y = lax.conv_general_dilated(x_nchw, wt1, (1, 1), 'VALID',
                                     dimension_numbers=('NCHW', 'OIHW', 'NCHW'))
        y = y + b1.reshape(1, -1, 1, 1)
        wt2 = jnp.transpose(w2.reshape(3, 3, Cout), (2, 0, 1))[:, None, :, :]  # (Cout, 1, 3, 3)
        z = lax.conv_general_dilated(y, wt2, (1, 1), ((1, 1), (1, 1)),
                                     dimension_numbers=('NCHW', 'OIHW', 'NCHW'),
                                     feature_group_count=Cout)
        return z + b2.reshape(1, -1, 1, 1)

    zf = branch(p['w1f'], p['b1f'], p['w2f'], p['b2f'])
    zm = branch(p['w1m'], p['b1m'], p['w2m'], p['b2m'])
    f = jnp.where(zf > 0, zf, jnp.exp(jnp.minimum(zf, 0.0)) - 1.0)
    m = jax.nn.sigmoid(zm)
    out = f * m
    mean = jnp.mean(out, axis=(0, 2, 3), keepdims=True)
    var = jnp.mean((out - mean) ** 2, axis=(0, 2, 3), keepdims=True)
    norm = (out - mean) / jnp.sqrt(var + EPS)
    return norm * p['gamma'].reshape(1, -1, 1, 1) + p['beta'].reshape(1, -1, 1, 1)


if __name__ == "__main__":
    B, Cin, Cout, H, W = 2, 4, 8, 16, 16

    key = jax.random.PRNGKey(0)
    ks = jax.random.split(key, 12)
    x = jax.random.normal(ks[0], (B, Cin, H, W), jnp.float32)

    # Deterministic synthetic parameters (PyTorch shapes: conv1 (Cout,Cin,1,1),
    # depthwise (Cout,1,3,3), stored here as (Cin,Cout) and (9,Cout) with k=kh*3+kw).
    params = {
        'w1f': 0.3 * jax.random.normal(ks[1], (Cin, Cout), jnp.float32),
        'b1f': 0.1 * jax.random.normal(ks[2], (1, Cout), jnp.float32),
        'w2f': 0.3 * jax.random.normal(ks[3], (9, Cout), jnp.float32),
        'b2f': 0.1 * jax.random.normal(ks[4], (1, Cout), jnp.float32),
        'w1m': 0.3 * jax.random.normal(ks[5], (Cin, Cout), jnp.float32),
        'b1m': 0.1 * jax.random.normal(ks[6], (1, Cout), jnp.float32),
        'w2m': 0.3 * jax.random.normal(ks[7], (9, Cout), jnp.float32),
        'b2m': 0.1 * jax.random.normal(ks[8], (1, Cout), jnp.float32),
        'gamma': 1.0 + 0.1 * jax.random.normal(ks[9], (1, Cout), jnp.float32),
        'beta': 0.1 * jax.random.normal(ks[10], (1, Cout), jnp.float32),
    }

    fwd = jax.jit(gated_block_sd, static_argnames="row_tile")

    # Auto tile (whole image per grid step, NT=1): no halo duplication at all.
    out_full = fwd(x, params)
    jax.block_until_ready(out_full)

    # Forced 2 row tiles per image: exercises the NT>1 halo path and the (B, NT) grid.
    out_tiled = fwd(x, params, row_tile=8)
    jax.block_until_ready(out_tiled)

    ref = reference_forward(x, params)
    np.testing.assert_allclose(np.asarray(out_full), np.asarray(ref), rtol=3e-5, atol=3e-5)
    np.testing.assert_allclose(np.asarray(out_tiled), np.asarray(ref), rtol=3e-5, atol=3e-5)

    print("KERNEL_OK")
</pallas_src>

<mosaic_0001>
module attributes {stable_mosaic.version = 11 : i64} {
  func.func @_gated_kernel(%arg0: i32, %arg1: i32, %arg2: memref<1x1x18x90xf32, #tpu.memory_space<vmem>>, %arg3: memref<3x90x256xf32, #tpu.memory_space<vmem>>, %arg4: memref<1x1x16x128xf32, #tpu.memory_space<vmem>>, %arg5: memref<1x1x2x128xf32, #tpu.memory_space<vmem>>) attributes {dimension_semantics = [#tpu.dimension_semantics<parallel>, #tpu.dimension_semantics<parallel>], iteration_bounds = array<i64: 2, 1>, scalar_prefetch = 0 : i64, scratch_operands = 0 : i64, tpu.core_type = #tpu.core_type<tc>, window_params = [{transform_indices = @transform_0, window_bounds = array<i64: 1, 1, 18, 90>}, {pipeline_mode = #tpu.pipeline_mode<synchronous>, transform_indices = @transform_1, window_bounds = array<i64: 3, 90, 256>}, {transform_indices = @transform_2, window_bounds = array<i64: 1, 1, 16, 128>}, {transform_indices = @transform_3, window_bounds = array<i64: 1, 1, 2, 128>}]} {
    %c0 = arith.constant 0 : index
    %c0_0 = arith.constant 0 : index
    %c0_1 = arith.constant 0 : index
    %c0_2 = arith.constant 0 : index
    %0 = vector.load %arg2[%c0, %c0_0, %c0_1, %c0_2] : memref<1x1x18x90xf32, #tpu.memory_space<vmem>>, vector<1x1x18x90xf32>
    %1 = vector.shape_cast %0 : vector<1x1x18x90xf32> to vector<18x90xf32>
    %2 = vector.extract_strided_slice %1 {offsets = [0, 0], sizes = [16, 90], strides = [1, 1]} : vector<18x90xf32> to vector<16x90xf32>
    %c0_3 = arith.constant 0 : index
    %c0_4 = arith.constant 0 : index
    %c0_5 = arith.constant 0 : index
    %3 = vector.load %arg3[%c0_3, %c0_4, %c0_5] : memref<3x90x256xf32, #tpu.memory_space<vmem>>, vector<1x90x256xf32>
    %4 = vector.shape_cast %3 : vector<1x90x256xf32> to vector<90x256xf32>
    %cst = arith.constant dense<0.000000e+00> : vector<16x256xf32>
    %5 = tpu.matmul %2, %4, %cst {dimension_numbers = #tpu.dot_dimension_numbers<[1], [0], [0], [1], [0, 0, 1, 1], [], []>} : vector<16x90xf32>, vector<90x256xf32>, vector<16x256xf32> -> vector<16x256xf32>
    %6 = vector.extract_strided_slice %1 {offsets = [1, 0], sizes = [16, 90], strides = [1, 1]} : vector<18x90xf32> to vector<16x90xf32>
    %c1 = arith.constant 1 : index
    %c0_6 = arith.constant 0 : index
    %c0_7 = arith.constant 0 : index
    %7 = vector.load %arg3[%c1, %c0_6, %c0_7] : memref<3x90x256xf32, #tpu.memory_space<vmem>>, vector<1x90x256xf32>
    %8 = vector.shape_cast %7 : vector<1x90x256xf32> to vector<90x256xf32>
    %cst_8 = arith.constant dense<0.000000e+00> : vector<16x256xf32>
    %9 = tpu.matmul %6, %8, %cst_8 {dimension_numbers = #tpu.dot_dimension_numbers<[1], [0], [0], [1], [0, 0, 1, 1], [], []>} : vector<16x90xf32>, vector<90x256xf32>, vector<16x256xf32> -> vector<16x256xf32>
    %10 = arith.addf %5, %9 : vector<16x256xf32>
    %11 = vector.extract_strided_slice %1 {offsets = [2, 0], sizes = [16, 90], strides = [1, 1]} : vector<18x90xf32> to vector<16x90xf32>
    %c2 = arith.constant 2 : index
    %c0_9 = arith.constant 0 : index
    %c0_10 = arith.constant 0 : index
    %12 = vector.load %arg3[%c2, %c0_9, %c0_10] : memref<3x90x256xf32, #tpu.memory_space<vmem>>, vector<1x90x256xf32>
    %13 = vector.shape_cast %12 : vector<1x90x256xf32> to vector<90x256xf32>
    %cst_11 = arith.constant dense<0.000000e+00> : vector<16x256xf32>
    %14 = tpu.matmul %11, %13, %cst_11 {dimension_numbers = #tpu.dot_dimension_numbers<[1], [0], [0], [1], [0, 0, 1, 1], [], []>} : vector<16x90xf32>, vector<90x256xf32>, vector<16x256xf32> -> vector<16x256xf32>
    %15 = arith.addf %10, %14 : vector<16x256xf32>
    %16 = vector.extract_strided_slice %15 {offsets = [0, 0], sizes = [16, 128], strides = [1, 1]} : vector<16x256xf32> to vector<16x128xf32>
    %17 = vector.extract_strided_slice %15 {offsets = [0, 128], sizes = [16, 128], strides = [1, 1]} : vector<16x256xf32> to vector<16x128xf32>
    %cst_12 = arith.constant 0.000000e+00 : f32
    %18 = vector.broadcast %cst_12 : f32 to vector<16x128xf32>
    %19 = arith.cmpf ogt, %16, %18 : vector<16x128xf32>
    %cst_13 = arith.constant 0.000000e+00 : f32
    %20 = vector.broadcast %cst_13 : f32 to vector<16x128xf32>
    %21 = arith.minimumf %16, %20 : vector<16x128xf32>
    %22 = math.exp %21 : vector<16x128xf32>
    %cst_14 = arith.constant 1.000000e+00 : f32
    %23 = vector.broadcast %cst_14 : f32 to vector<16x128xf32>
    %24 = arith.subf %22, %23 : vector<16x128xf32>
    %25 = arith.select %19, %16, %24 : vector<16x128xi1>, vector<16x128xf32>
    %26 = arith.negf %17 : vector<16x128xf32>
    %27 = math.exp %26 : vector<16x128xf32>
    %cst_15 = arith.constant 1.000000e+00 : f32
    %28 = vector.broadcast %cst_15 : f32 to vector<16x128xf32>
    %29 = arith.addf %28, %27 : vector<16x128xf32>
    %30 = arith.divf %28, %29 : vector<16x128xf32>
    %31 = arith.mulf %25, %30 : vector<16x128xf32>
    %cst_16 = arith.constant dense<0.000000e+00> : vector<128xf32>
    %32 = vector.multi_reduction <add>, %31, %cst_16 [0] : vector<16x128xf32> to vector<128xf32>
    %33 = vector.shape_cast %32 : vector<128xf32> to vector<1x128xf32>
    %34 = arith.mulf %31, %31 : vector<16x128xf32>
    %cst_17 = arith.constant dense<0.000000e+00> : vector<128xf32>
    %35 = vector.multi_reduction <add>, %34, %cst_17 [0] : vector<16x128xf32> to vector<128xf32>
    %36 = vector.shape_cast %35 : vector<128xf32> to vector<1x128xf32>
    %37 = tpu.concatenate %33, %36 in 0 : vector<1x128xf32>, vector<1x128xf32> -> vector<2x128xf32>
    %38 = vector.shape_cast %37 : vector<2x128xf32> to vector<1x1x2x128xf32>
    %c0_18 = arith.constant 0 : index
    %c0_19 = arith.constant 0 : index
    %c0_20 = arith.constant 0 : index
    %c0_21 = arith.constant 0 : index
    %39 = vector.load %arg5[%c0_18, %c0_19, %c0_20, %c0_21] : memref<1x1x2x128xf32, #tpu.memory_space<vmem>>, vector<1x1x2x128xf32>
    tpu.vector_store %arg5[%c0_18, %c0_19, %c0_20, %c0_21], %38 {strides = array<i32>} : memref<1x1x2x128xf32, #tpu.memory_space<vmem>>, vector<1x1x2x128xf32>,
    %40 = vector.shape_cast %31 : vector<16x128xf32> to vector<1x1x16x128xf32>
    %c0_22 = arith.constant 0 : index
    %c0_23 = arith.constant 0 : index
    %c0_24 = arith.constant 0 : index
    %c0_25 = arith.constant 0 : index
    %41 = vector.load %arg4[%c0_22, %c0_23, %c0_24, %c0_25] : memref<1x1x16x128xf32, #tpu.memory_space<vmem>>, vector<1x1x16x128xf32>
    tpu.vector_store %arg4[%c0_22, %c0_23, %c0_24, %c0_25], %40 {strides = array<i32>} : memref<1x1x16x128xf32, #tpu.memory_space<vmem>>, vector<1x1x16x128xf32>,
    return
  }
  func.func @transform_0(%arg0: i32, %arg1: i32) -> (i32, i32, i32, i32) {
    %c0_i32 = arith.constant 0 : i32
    %c0_i32_0 = arith.constant 0 : i32
    %c0_i32_1 = arith.constant 0 : i32
    return %arg0, %arg1, %c0_i32, %c0_i32_0 : i32, i32, i32, i32
  }
  func.func @transform_1(%arg0: i32, %arg1: i32) -> (i32, i32, i32) {
    %c0_i32 = arith.constant 0 : i32
    %c0_i32_0 = arith.constant 0 : i32
    %c0_i32_1 = arith.constant 0 : i32
    %c0_i32_2 = arith.constant 0 : i32
    return %c0_i32, %c0_i32_0, %c0_i32_1 : i32, i32, i32
  }
  func.func @transform_2(%arg0: i32, %arg1: i32) -> (i32, i32, i32, i32) {
    %c0_i32 = arith.constant 0 : i32
    %c0_i32_0 = arith.constant 0 : i32
    %c0_i32_1 = arith.constant 0 : i32
    return %arg0, %arg1, %c0_i32, %c0_i32_0 : i32, i32, i32, i32
  }
  func.func @transform_3(%arg0: i32, %arg1: i32) -> (i32, i32, i32, i32) {
    %c0_i32 = arith.constant 0 : i32
    %c0_i32_0 = arith.constant 0 : i32
    %c0_i32_1 = arith.constant 0 : i32
    return %arg0, %arg1, %c0_i32, %c0_i32_0 : i32, i32, i32, i32
  }
}

</mosaic_0001>

<bundles_post_ra>
// kernel: gated_block_sd.1
= control target key start
LH: loop header
LB: loop body
LE: loop exit
PB: predicated region body
PF: predicated region fallthrough
CT: control target
= control target key end

     0   :  { %s948_s12 = smov 0   ;;  %s950_s13 = smov 0   ;;  %s1252_s0 = inlined_call_operand.vmem [shape: f32[2,1,18,90], index: 0, kind: input, shape index: {}]   ;;  %s1253_s1 = inlined_call_operand.vmem [shape: f32[3,90,256], index: 1, kind: input, shape index: {}]   ;;  %s1254_s2 = inlined_call_operand.vmem [shape: f32[2,1,16,128], index: 2, kind: output, shape index: {0}]   ;;  %s1255_s3 = inlined_call_operand.vmem [shape: f32[2,1,2,128], index: 3, kind: output, shape index: {1}]  }
   0x1   :  { %s952_s14 = smov 0  }
   0x2 LB: > { %s26_s15 = sadd.s32 1, %s921_s13  ;;  %p769_p0 = scmp.ge.s32.totalorder %s925_s14, 1  ;;  %s925_s14 = sphi %s952_s14, %s14_s14   ;;  %s921_s13 = sphi %s950_s13, %s1257_s13   ;;  %s917_s12 = sphi %s948_s12, %s1256_s12  }
   0x3   : > { %p28_p1 = scmp.ge.s32.totalorder %s26_s15, 2  ;;  %p162_p2 = scmp.lt.s32.totalorder %s925_s14, 3 }
   0x5   : > { %s1259_s15 = smov (%p28_p1, %s26_s15), 0  ;;  %p163_p3 = pnand %p769_p0, %p162_p2 }
   0x6   : > { %p201_p4 = scmp.lt.s32.totalorder (!%p163_p3), %s917_s12, 1 }
   0x7   : > { %166 = sbr.rel (%p163_p3) target bundleno = 316 (0x13c), region = 28 }
   0xc   : > { %v797_v0 = vld [vmem:[%s1253_s1 + $0x178] sm:$0x3]  ;;  %vm292_vm0 = vcmask 1041408   ;;  %v795_v2 = vld [vmem:[%s1253_s1 + $0x168] sm:$0xff]  ;;  %v796_v3 = vld [vmem:[%s1253_s1 + $0x170] sm:$0x3] }
   0xd   : > { %v252_v1 = vld [vmem:[%s1253_s1 + $0xb8] sm:$0x3]  ;;  %798 = vmatprep.subr.msk.mxu0 %vm292_vm0, %v797_v0  ;;  %v251_v4 = vld [vmem:[%s1253_s1 + $0xb0] sm:$0x3]  ;;  %v250_v5 = vld [vmem:[%s1253_s1 + $0xa8] sm:$0xff]  ;;  %s1261_s12 = smov (!%p201_p4, %s917_s12), 1 }
   0xe   : > { %802 = vmatprep.subr.msk.mxu1 %vm292_vm0, %v252_v1  ;;  %799 = vmatpush1.msk.msra.mxu0 %vm292_vm0, %v796_v3  ;;  %v794_v6 = vld [vmem:[%s1253_s1 + $0x160] sm:$0xff]  ;;  %v793_v8 = vld [vmem:[%s1253_s1 + $0x158] sm:$0xff]  ;;  %v792_v10 = vld [vmem:[%s1253_s1 + $0x150] sm:$0xff]  ;;  %s865_s18 = smul.u32 24, %s1261_s12  ;;  %vm281_vm1 = vcmask 1046528   ;;  %vm287_vm2 = vcmask 736256  }
   0xf   : > { %803 = vmatpush1.msk.msra.mxu1 %vm292_vm0, %v251_v4  ;;  %v249_v7 = vld [vmem:[%s1253_s1 + $0xa0] sm:$0xff]  ;;  %309 = vmatprep.subr.mxu0 %v795_v2  ;;  %v248_v9 = vld [vmem:[%s1253_s1 + $0x98] sm:$0xff]  ;;  %v247_v11 = vld [vmem:[%s1253_s1 + $0x90] sm:$0xff]  ;;  %v927_v53 = vmov 0.0   ;;  %vm488_vm3 = vcmask 1045504   ;;  %s840_s28 = sshll.u32 %s1261_s12, 4 }
  0x10   : > { %396 = vmatprep.subr.mxu1 %v250_v5  ;;  %310 = vmatpush1.msra.mxu0 %v794_v6  ;;  %v791_v12 = vld [vmem:[%s1253_s1 + $0x148] sm:$0xff]  ;;  %v790_v14 = vld [vmem:[%s1253_s1 + $0x140] sm:$0xff]  ;;  %v789_v16 = vld [vmem:[%s1253_s1 + $0x138] sm:$0xff]  ;;  %s1078_s10 = scalar_lea.vmem %s1252_s0, %s865_s18  ;;  %s218_s4 = scalar_lea.vmem %s1254_s2, %s840_s28  ;;  %vm627_vm6 = vcmask 1040384  }
  0x11   : > { %397 = vmatpush1.msra.mxu1 %v249_v7  ;;  %v246_v13 = vld [vmem:[%s1253_s1 + $0x88] sm:$0xff]  ;;  %311 = vmatprep.subr.mxu0 %v793_v8  ;;  %v245_v15 = vld [vmem:[%s1253_s1 + $0x80] sm:$0xff]  ;;  %v244_v17 = vld [vmem:[%s1253_s1 + $0x78] sm:$0xff]  ;;  %s773_s5 = sshll.u32 %s1261_s12, 1 }
  0x12   : > { %398 = vmatprep.subr.mxu1 %v248_v9  ;;  %312 = vmatpush1.msra.mxu0 %v792_v10  ;;  %v788_v18 = vld [vmem:[%s1253_s1 + $0x130] sm:$0xff]  ;;  %v787_v20 = vld [vmem:[%s1253_s1 + $0x128] sm:$0xff]  ;;  %v786_v22 = vld [vmem:[%s1253_s1 + $0x120] sm:$0xff] }
  0x13   : > { %399 = vmatpush1.msra.mxu1 %v247_v11  ;;  %313 = vmatprep.subr.mxu0 %v791_v12  ;;  %v243_v19 = vld [vmem:[%s1253_s1 + $0x70] sm:$0xff]  ;;  %v242_v21 = vld [vmem:[%s1253_s1 + $0x68] sm:$0xff]  ;;  %v241_v23 = vld [vmem:[%s1253_s1 + $0x60] sm:$0xff] }
  0x14   : > { %400 = vmatprep.subr.mxu1 %v246_v13  ;;  %314 = vmatpush1.msra.mxu0 %v790_v14  ;;  %v785_v24 = vld [vmem:[%s1253_s1 + $0x118] sm:$0xff]  ;;  %v784_v26 = vld [vmem:[%s1253_s1 + $0x110] sm:$0xff]  ;;  %v783_v28 = vld [vmem:[%s1253_s1 + $0x108] sm:$0xff] }
  0x15   : > { %401 = vmatpush1.msra.mxu1 %v245_v15  ;;  %315 = vmatprep.subr.mxu0 %v789_v16  ;;  %v240_v25 = vld [vmem:[%s1253_s1 + $0x58] sm:$0xff]  ;;  %v239_v27 = vld [vmem:[%s1253_s1 + $0x50] sm:$0xff]  ;;  %v238_v29 = vld [vmem:[%s1253_s1 + $0x48] sm:$0xff] }
  0x16   : > { %402 = vmatprep.subr.mxu1 %v244_v17  ;;  %316 = vmatpush1.msra.mxu0 %v788_v18  ;;  %v782_v30 = vld [vmem:[%s1253_s1 + $0x100] sm:$0xff]  ;;  %v781_v32 = vld [vmem:[%s1253_s1 + $0xf8] sm:$0xff]  ;;  %v780_v34 = vld [vmem:[%s1253_s1 + $0xf0] sm:$0xff] }
  0x17   : > { %403 = vmatpush1.msra.mxu1 %v243_v19  ;;  %317 = vmatprep.subr.mxu0 %v787_v20  ;;  %v237_v31 = vld [vmem:[%s1253_s1 + $0x40] sm:$0xff]  ;;  %v236_v33 = vld [vmem:[%s1253_s1 + $0x38] sm:$0xff]  ;;  %v235_v35 = vld [vmem:[%s1253_s1 + $0x30] sm:$0xff] }
  0x18   : > { %404 = vmatprep.subr.mxu1 %v242_v21  ;;  %318 = vmatpush1.msra.mxu0 %v786_v22  ;;  %v779_v36 = vld [vmem:[%s1253_s1 + $0xe8] sm:$0xff]  ;;  %v1099_v38 = vld [vmem:[%s1078_s10] sm:$0xff]  ;;  %v777_v42 = vld [vmem:[%s1253_s1 + $0xd8] sm:$0xff] }
  0x19   : > { %405 = vmatpush1.msra.mxu1 %v241_v23  ;;  %319 = vmatprep.subr.mxu0 %v785_v24  ;;  %v234_v37 = vld [vmem:[%s1253_s1 + $0x28] sm:$0xff]  ;;  %v778_v40 = vld [vmem:[%s1253_s1 + $0xe0] sm:$0xff]  ;;  %v232_v43 = vld [vmem:[%s1253_s1 + $0x18] sm:$0xff]  ;;  %v282_v46 = vrot.slane %v1099_v38, 1  ;;  %v489_v14 = vrot.slane %v1099_v38, 2 }
  0x1a   : > { %406 = vmatprep.subr.mxu1 %v240_v25  ;;  %320 = vmatpush1.msra.mxu0 %v784_v26  ;;  %v1102_v39 = vld [vmem:[%s1078_s10 + $0x8] sm:$0xff]  ;;  %v233_v41 = vld [vmem:[%s1253_s1 + $0x20] sm:$0xff]  ;;  %v776_v44 = vld [vmem:[%s1253_s1 + $0xd0] sm:$0xff] }
  0x1b   : > { %407 = vmatpush1.msra.mxu1 %v239_v27  ;;  %321 = vmatprep.subr.mxu0 %v783_v28  ;;  %v231_v45 = vld [vmem:[%s1253_s1 + $0x10] sm:$0xff]  ;;  %v283_v47 = vrot.slane %v1102_v39, 1  ;;  %v775_v48 = vld [vmem:[%s1253_s1 + $0xc8] sm:$0xff]  ;;  %v774_v50 = vld [vmem:[%s1253_s1 + $0xc0] sm:$0xff]  ;;  %v490_v15 = vrot.slane %v1102_v39, 2 }
  0x1c   : > { %408 = vmatprep.subr.mxu1 %v238_v29  ;;  %322 = vmatpush1.msra.mxu0 %v782_v30  ;;  %v230_v49 = vld [vmem:[%s1253_s1 + $0x8] sm:$0xff]  ;;  %v229_v51 = vld [vmem:[%s1253_s1] sm:$0xff]  ;;  %v829_v54 = vld [vmem:[%s1253_s1 + $0x238] sm:$0x3] }
  0x1d   : > { %409 = vmatpush1.msra.mxu1 %v237_v31  ;;  %323 = vmatprep.subr.mxu0 %v781_v32  ;;  %v284_v52 = vsel %vm281_vm1, %v282_v46, %v283_v47  ;;  %v828_v55 = vld [vmem:[%s1253_s1 + $0x230] sm:$0x3]  ;;  %v827_v56 = vld [vmem:[%s1253_s1 + $0x228] sm:$0xff]  ;;  %v826_v57 = vld [vmem:[%s1253_s1 + $0x220] sm:$0xff]  ;;  %v491_v20 = vsel %vm488_vm3, %v489_v14, %v490_v15 }
  0x1e   : > { %410 = vmatprep.subr.mxu1 %v236_v33  ;;  %324 = vmatpush1.msra.mxu0 %v780_v34  ;;  %v825_v58 = vld [vmem:[%s1253_s1 + $0x218] sm:$0xff]  ;;  %v824_v59 = vld [vmem:[%s1253_s1 + $0x210] sm:$0xff]  ;;  %v823_v60 = vld [vmem:[%s1253_s1 + $0x208] sm:$0xff] }
  0x1f   : > { %411 = vmatpush1.msra.mxu1 %v235_v35  ;;  %325 = vmatprep.subr.mxu0 %v779_v36  ;;  %v822_v61 = vld [vmem:[%s1253_s1 + $0x200] sm:$0xff]  ;;  %v821_v62 = vld [vmem:[%s1253_s1 + $0x1f8] sm:$0xff]  ;;  %v820_v63 = vld [vmem:[%s1253_s1 + $0x1f0] sm:$0xff] }
  0x20   : > { %412 = vmatprep.subr.mxu1 %v234_v37  ;;  %326 = vmatpush1.msra.mxu0 %v778_v40  ;;  %v819_v0 = vld [vmem:[%s1253_s1 + $0x1e8] sm:$0xff]  ;;  %v818_v1 = vld [vmem:[%s1253_s1 + $0x1e0] sm:$0xff]  ;;  %v817_v2 = vld [vmem:[%s1253_s1 + $0x1d8] sm:$0xff] }
  0x21   : > { %413 = vmatpush1.msra.mxu1 %v233_v41  ;;  %327 = vmatprep.subr.mxu0 %v777_v42  ;;  %v228_v3 = vld [vmem:[%s1078_s10 + $0x10] sm:$0x3]  ;;  %v815_v5 = vld [vmem:[%s1253_s1 + $0x1c8] sm:$0xff]  ;;  %v814_v6 = vld [vmem:[%s1253_s1 + $0x1c0] sm:$0xff]  ;;  %s225_s10 = scalar_lea.vmem %s1255_s3, %s773_s5 }
  0x22   : > { %414 = vmatprep.subr.mxu1 %v232_v43  ;;  %328 = vmatpush1.msra.mxu0 %v776_v44  ;;  %v816_v4 = vld [vmem:[%s1253_s1 + $0x1d0] sm:$0xff]  ;;  %v285_v7 = vrot.slane %v228_v3, 1  ;;  %v813_v8 = vld [vmem:[%s1253_s1 + $0x1b8] sm:$0xff]  ;;  %v811_v11 = vld [vmem:[%s1253_s1 + $0x1a8] sm:$0xff]  ;;  %v492_v16 = vrot.slane %v228_v3, 2 }
  0x23   : > { %415 = vmatpush1.msra.mxu1 %v231_v45  ;;  %329 = vmatprep.subr.mxu0 %v775_v48  ;;  %v812_v9 = vld [vmem:[%s1253_s1 + $0x1b0] sm:$0xff]  ;;  %v810_v12 = vld [vmem:[%s1253_s1 + $0x1a0] sm:$0xff]  ;;  %v809_v13 = vld [vmem:[%s1253_s1 + $0x198] sm:$0xff] }
  0x24   : > { %416 = vmatprep.subr.mxu1 %v230_v49  ;;  %330 = vmatpush1.msra.mxu0 %v774_v50  ;;  %v286_v10 = vsel %vm281_vm1, %v283_v47, %v285_v7  ;;  %v808_v17 = vld [vmem:[%s1253_s1 + $0x190] sm:$0xff]  ;;  %v807_v18 = vld [vmem:[%s1253_s1 + $0x188] sm:$0xff]  ;;  %v806_v19 = vld [vmem:[%s1253_s1 + $0x180] sm:$0xff]  ;;  %v493_v21 = vsel %vm488_vm3, %v490_v15, %v492_v16 }
  0x25   : > { %363 = vmatprep.mubr.f32.mxu0 %v927_v53  ;;  %417 = vmatpush1.msra.mxu1 %v229_v51 }
  0x26   : > { %450 = vmatprep.mubr.f32.mxu1 %v927_v53  ;;  %800 = vmatmul.mubr.msk.f32.vlgmr.msra.gmra.mxu0 %vm287_vm2, %v284_v52 }
  0x27   : > { %804 = vmatmul.mubr.msk.f32.vlgmr.msra.gmra.mxu1 %vm287_vm2, %v1099_v38  ;;  %830 = vmatprep.subr.msk.mxu0 %vm292_vm0, %v829_v54 }
  0x28   : > { %841 = vmatprep.subr.msk.mxu1 %vm292_vm0, %v829_v54  ;;  %831 = vmatpush1.msk.msra.mxu0 %vm292_vm0, %v828_v55 }
  0x29   : > { %853 = vmatpush1.msk.msra.mxu1 %vm292_vm0, %v828_v55  ;;  %514 = vmatprep.subr.mxu0 %v827_v56 }
  0x2a   : > { %842 = vmatprep.subr.mxu1 %v827_v56  ;;  %515 = vmatpush1.msra.mxu0 %v826_v57 }
  0x2b   : > { %854 = vmatpush1.msra.mxu1 %v826_v57  ;;  %516 = vmatprep.subr.mxu0 %v825_v58 }
  0x2c   : > { %843 = vmatprep.subr.mxu1 %v825_v58  ;;  %517 = vmatpush1.msra.mxu0 %v824_v59 }
  0x2d   : > { %855 = vmatpush1.msra.mxu1 %v824_v59  ;;  %518 = vmatprep.subr.mxu0 %v823_v60 }
  0x2e   : > { %844 = vmatprep.subr.mxu1 %v823_v60  ;;  %519 = vmatpush1.msra.mxu0 %v822_v61 }
  0x2f   : > { %856 = vmatpush1.msra.mxu1 %v822_v61  ;;  %520 = vmatprep.subr.mxu0 %v821_v62 }
  0x30   : > { %845 = vmatprep.subr.mxu1 %v821_v62  ;;  %521 = vmatpush1.msra.mxu0 %v820_v63 }
  0x31   : > { %857 = vmatpush1.msra.mxu1 %v820_v63  ;;  %522 = vmatprep.subr.mxu0 %v819_v0 }
  0x32   : > { %846 = vmatprep.subr.mxu1 %v819_v0  ;;  %523 = vmatpush1.msra.mxu0 %v818_v1 }
  0x33   : > { %858 = vmatpush1.msra.mxu1 %v818_v1  ;;  %524 = vmatprep.subr.mxu0 %v817_v2 }
  0x34   : > { %847 = vmatprep.subr.mxu1 %v817_v2  ;;  %525 = vmatpush1.msra.mxu0 %v816_v4 }
  0x35   : > { %859 = vmatpush1.msra.mxu1 %v816_v4  ;;  %526 = vmatprep.subr.mxu0 %v815_v5 }
  0x36   : > { %848 = vmatprep.subr.mxu1 %v815_v5  ;;  %527 = vmatpush1.msra.mxu0 %v814_v6 }
  0x37   : > { %860 = vmatpush1.msra.mxu1 %v814_v6  ;;  %528 = vmatprep.subr.mxu0 %v813_v8 }
  0x38   : > { %849 = vmatprep.subr.mxu1 %v813_v8  ;;  %369 = vmatprep.mubr.f32.mxu0 %v927_v53 }
  0x39   : > { %456 = vmatprep.mubr.f32.mxu1 %v927_v53  ;;  %529 = vmatpush1.msra.mxu0 %v812_v9 }
  0x3a   : > { %861 = vmatpush1.msra.mxu1 %v812_v9  ;;  %801 = vmatmul.mubr.msk.f32.gmra.mxu0 %vm287_vm2, %v286_v10 }
  0x3b   : > { %805 = vmatmul.mubr.msk.f32.gmra.mxu1 %vm287_vm2, %v1102_v39  ;;  %530 = vmatprep.subr.mxu0 %v811_v11 }
  0x3c   : > { %850 = vmatprep.subr.mxu1 %v811_v11  ;;  %531 = vmatpush1.msra.mxu0 %v810_v12 }
  0x3d   : > { %862 = vmatpush1.msra.mxu1 %v810_v12  ;;  %532 = vmatprep.subr.mxu0 %v809_v13 }
  0x3e   : > { %851 = vmatprep.subr.mxu1 %v809_v13  ;;  %533 = vmatpush1.msra.mxu0 %v808_v17 }
  0x3f   : > { %863 = vmatpush1.msra.mxu1 %v808_v17  ;;  %534 = vmatprep.subr.mxu0 %v807_v18 }
  0x40   : > { %852 = vmatprep.subr.mxu1 %v807_v18  ;;  %535 = vmatpush1.msra.mxu0 %v806_v19 }
  0x41   : > { %864 = vmatpush1.msra.mxu1 %v806_v19  ;;  %568 = vmatprep.mubr.f32.mxu0 %v927_v53 }
  0x42   : > { %574 = vmatprep.mubr.f32.mxu1 %v927_v53  ;;  %832 = vmatmul.mubr.msk.f32.vlgmr.msra.gmra.mxu0 %vm287_vm2, %v491_v20 }
  0x43   : > { %833 = vmatmul.mubr.msk.f32.vlgmr.msra.gmra.mxu1 %vm287_vm2, %v493_v21 }
  0xe6   : > { %v365_v22 = vpop.f32.mrf.mxu0 }
  0xe7   : > { %v452_v23 = vpop.f32.mrf.mxu1 }
  0xe8   : > { %v367_v24 = vpop.f32.mrf.mxu0  ;;  %v453_v36 = vadd.f32 %v452_v23, %v365_v22 }
  0xe9   : > { %v454_v25 = vpop.f32.mrf.mxu1 }
  0xea   : > { %v455_v32 = vadd.f32 %v454_v25, %v367_v24 }
  0xfa   : > { %v371_v26 = vpop.f32.mrf.mxu0 }
  0xfb   : > { %v458_v27 = vpop.f32.mrf.mxu1 }
  0xfc   : > { %v373_v28 = vpop.f32.mrf.mxu0  ;;  %v459_v39 = vadd.f32 %v458_v27, %v371_v26 }
  0xfd   : > { %v460_v29 = vpop.f32.mrf.mxu1 }
  0xfe   : > { %v461_v33 = vadd.f32 %v460_v29, %v373_v28 }
 0x102   : > { %v570_v30 = vpop.f32.mrf.mxu0 }
 0x103   : > { %v576_v31 = vpop.f32.mrf.mxu1  ;;  %v581_v40 = vadd.f32 %v570_v30, %v453_v36 }
 0x104   : > { %v572_v34 = vpop.f32.mrf.mxu0  ;;  %v583_v43 = vadd.f32 %v576_v31, %v459_v39 }
 0x105   : > { %v578_v35 = vpop.f32.mrf.mxu1  ;;  %v582_v37 = vadd.f32 %v572_v34, %v455_v32  ;;  %v587_v44 = vmin.f32 %v581_v40, 0.0  ;;  %vm585_vm4 = vcmp.gt.f32.partialorder %v581_v40, 0.0 }
 0x106   : > { %v584_v38 = vadd.f32 %v578_v35, %v461_v33  ;;  %v588_v45 = vmin.f32 %v583_v43, 0.0  ;;  %vm586_vm5 = vcmp.gt.f32.partialorder %v583_v43, 0.0 }
 0x107   : > { %v836_v41 = vmul.f32 -1.442695, %v582_v37  ;;  %v589_v46 = vmul.f32 1.442695, %v587_v44 }
 0x108   : > { %v837_v42 = vmul.f32 -1.442695, %v584_v38  ;;  %v591_v47 = vmul.f32 1.442695, %v588_v45 }
 0x109   : > { %891 = vpow2.f32 %v836_v41 }
 0x10a   : > { %893 = vpow2.f32 %v837_v42 }
 0x10b   : > { %895 = vpow2.f32 %v589_v46 }
 0x10c   : > { %897 = vpow2.f32 %v591_v47 }
 0x116   : > { %v892_v48 = vpop.eup %891 }
 0x117   : > { %v894_v49 = vpop.eup %893  ;;  %v603_v50 = vadd.f32 1.0, %v892_v48 }
 0x118   : > { %v604_v51 = vadd.f32 1.0, %v894_v49  ;;  %v896_v52 = vpop.eup %895 }
 0x119   : > { %899 = vrcp.f32 %v603_v50  ;;  %v898_v53 = vpop.eup %897  ;;  %v834_v54 = vadd.f32 -1.0, %v896_v52 }
 0x11a   : > { %901 = vrcp.f32 %v604_v51  ;;  %v835_v55 = vadd.f32 -1.0, %v898_v53 }
 0x11b   : > { %v595_v57 = vsel %vm585_vm4, %v581_v40, %v834_v54 }
 0x11c   : > { %v596_v59 = vsel %vm586_vm5, %v583_v43, %v835_v55 }
 0x126   : > { %v900_v56 = vpop.eup %899 }
 0x127   : > { %v902_v58 = vpop.eup %901  ;;  %v609_v60 = vmul.f32 %v900_v56, %v595_v57 }
 0x128   : > { %v610_v61 = vmul.f32 %v902_v58, %v596_v59 }
 0x129   : > { %v618_v62 = vmul.f32 %v609_v60, %v609_v60  ;;  %630 = vst [vmem:[%s218_s4] sm:$0xff] %v609_v60 }
 0x12a   : > { %v611_v63 = vadd.f32 %v610_v61, %v609_v60  ;;  %v619_v0 = vmul.f32 %v610_v61, %v610_v61  ;;  %631 = vst [vmem:[%s218_s4 + $0x8] sm:$0xff] %v610_v61 }
 0x12c   : > { %v612_v1 = vrot.slane %v611_v63, 4  ;;  %v620_v2 = vadd.f32 %v619_v0, %v618_v62 }
 0x12e   : > { %v613_v3 = vadd.f32 %v612_v1, %v611_v63  ;;  %v621_v4 = vrot.slane %v620_v2, 4 }
 0x130   : > { %v614_v5 = vrot.slane %v613_v3, 2  ;;  %v622_v6 = vadd.f32 %v621_v4, %v620_v2 }
 0x132   : > { %v615_v7 = vadd.f32 %v614_v5, %v613_v3  ;;  %v623_v8 = vrot.slane %v622_v6, 2 }
 0x134   : > { %v616_v9 = vrot.slane %v615_v7, 1  ;;  %v624_v10 = vadd.f32 %v623_v8, %v622_v6 }
 0x136   : > { %v625_v11 = vrot.slane %v624_v10, 1  ;;  %v617_v12 = vadd.f32 %v616_v9, %v615_v7 }
 0x138   : > { %v626_v13 = vadd.f32 %v625_v11, %v624_v10 }
 0x13a   : > { %v628_v14 = vsel %vm627_vm6, %v617_v12, %v626_v13 }
 0x13b   : > { %629 = vst [vmem:[%s225_s10] sm:$0x3] %v628_v14 }
 0x13c PF: > { %s14_s14 = sadd.s32 1, %s925_s14   ;;  %s1256_s12 = smov %s921_s13 }
 0x13d   : > { %p11_p5 = scmp.ge.s32.totalorder %s14_s14, 4   ;;  %s1257_s13 = smov %s1259_s15 }
 0x13f   :  { %13 = sbr.rel (!%p11_p5) target bundleno = 2 (0x2), region = 72 }

</bundles_post_ra>
